<compile_context>
chip_gen: v7x
topology: tpu7x:2x2x1
jax: 0.10.0
libtpu: 0.0.40
codegen_flags: <defaults>
</compile_context>

<pallas_src>
import jax
import jax.numpy as jnp
from jax.experimental import pallas as pl
from jax.experimental.pallas import tpu as pltpu

D_IN = 19        # original input feature count
D_IN_PAD = 32    # zero-padded contraction dim for layer 1
D_HID = 64
D_OUT = 5

LANE_ALIGN = 256  # batch-tile alignment (lane axis; MXU-friendly on v6e/v7x)


def _round_up(n, m):
    return ((n + m - 1) // m) * m


def mlp_kernel(x_ref, w1_ref, b1_ref, w2_ref, b2_ref, w3_ref, b3_ref, o_ref):
    # Feature-major:
    #   x_ref : (32, TILE_B)  bf16   (features zero-padded 19->32, batch on lanes)
    #   w1    : (64, 32) bf16, w2: (64, 64) bf16, w3: (5, 64) bf16   (out, in)
    #   b1/b2 : (64, 1) f32,  b3: (5, 1) f32   (broadcast along lanes)
    #   o_ref : (5, TILE_B) f32
    h = jnp.dot(w1_ref[...], x_ref[...], preferred_element_type=jnp.float32)
    h = jnp.maximum(h + b1_ref[...], 0.0)
    h = jnp.dot(w2_ref[...], h.astype(jnp.bfloat16),
                preferred_element_type=jnp.float32)
    h = jnp.maximum(h + b2_ref[...], 0.0)
    out = jnp.dot(w3_ref[...], h.astype(jnp.bfloat16),
                  preferred_element_type=jnp.float32)
    o_ref[...] = (out + b3_ref[...]).astype(o_ref.dtype)


def prepare_params(params):
    """Convert f32 (in, out)-layout params into kernel format:
    transposed (out, in) bf16 weights (layer-1 in-dim zero-padded 19->32) and
    (out, 1) f32 biases."""
    w1t = jnp.zeros((D_HID, D_IN_PAD), jnp.float32).at[:, :D_IN].set(params["w1"].T)
    return {
        "w1t": w1t.astype(jnp.bfloat16),
        "w2t": params["w2"].T.astype(jnp.bfloat16),
        "w3t": params["w3"].T.astype(jnp.bfloat16),
        "b1": params["b1"].reshape(D_HID, 1).astype(jnp.float32),
        "b2": params["b2"].reshape(D_HID, 1).astype(jnp.float32),
        "b3": params["b3"].reshape(D_OUT, 1).astype(jnp.float32),
    }


def _choose_tile(B, tile_b):
    """Pick a lane-aligned batch tile; keep >=2 grid steps when batch allows."""
    tile_b = _round_up(max(int(tile_b), LANE_ALIGN), LANE_ALIGN)
    b_al = _round_up(B, LANE_ALIGN)
    tile = min(tile_b, b_al)
    if b_al >= 2 * LANE_ALIGN:
        # ensure the grid has at least 2 steps (v7x megacore sharding)
        tile = min(tile, _round_up(b_al // 2, LANE_ALIGN))
    return tile


def genocidax_net(x, params, *, tile_b=8192):
    """Forward pass. x: (B, 19) float32. params: dict of w1,b1,w2,b2,w3,b3 (f32,
    weights stored (in, out) so y = x @ W + b matches torch's x @ weight.T + bias)."""
    B = x.shape[0]
    kp = prepare_params(params)

    TILE_B = _choose_tile(B, tile_b)
    B_pad = _round_up(B, TILE_B)
    grid = (B_pad // TILE_B,)

    # Single fused pass over x: transpose + cast to bf16 + pad (19->32 features,
    # B -> B_pad batch).  No intermediate f32 (B,32) temporary.
    xT = jnp.zeros((D_IN_PAD, B_pad), jnp.bfloat16)
    xT = xT.at[:D_IN, :B].set(x.astype(jnp.bfloat16).T)

    const2 = lambda i: (0, 0)  # weights/biases: DMA'd once, VMEM-resident
    outT = pl.pallas_call(
        mlp_kernel,
        out_shape=jax.ShapeDtypeStruct((D_OUT, B_pad), jnp.float32),
        grid=grid,
        in_specs=[
            pl.BlockSpec((D_IN_PAD, TILE_B), lambda i: (0, i)),   # x^T tile
            pl.BlockSpec((D_HID, D_IN_PAD), const2),              # W1^T
            pl.BlockSpec((D_HID, 1), const2),                     # b1
            pl.BlockSpec((D_HID, D_HID), const2),                 # W2^T
            pl.BlockSpec((D_HID, 1), const2),                     # b2
            pl.BlockSpec((D_OUT, D_HID), const2),                 # W3^T
            pl.BlockSpec((D_OUT, 1), const2),                     # b3
        ],
        out_specs=pl.BlockSpec((D_OUT, TILE_B), lambda i: (0, i)),
        compiler_params=pltpu.CompilerParams(
            dimension_semantics=("parallel",),       # megacore sharding on v7x
            vmem_limit_bytes=32 * 1024 * 1024,       # safe on v5e/v6e/v7x
        ),
    )(xT, kp["w1t"], kp["b1"], kp["w2t"], kp["b2"], kp["w3t"], kp["b3"])

    # TODO(synk): emit bf16 output here if downstream consumers allow it
    return outT[:, :B].T


def init_params(key):
    """Deterministic init mirroring nn.Linear default (uniform +/- 1/sqrt(fan_in)).
    Weights stored as (in_features, out_features); biases as (out_features,)."""
    dims = [(D_IN, D_HID), (D_HID, D_HID), (D_HID, D_OUT)]
    params = {}
    keys = jax.random.split(key, 2 * len(dims))
    for i, (fan_in, fan_out) in enumerate(dims):
        bound = 1.0 / jnp.sqrt(float(fan_in))
        params[f"w{i + 1}"] = jax.random.uniform(
            keys[2 * i], (fan_in, fan_out), minval=-bound, maxval=bound,
            dtype=jnp.float32)
        params[f"b{i + 1}"] = jax.random.uniform(
            keys[2 * i + 1], (fan_out,), minval=-bound, maxval=bound,
            dtype=jnp.float32)
    return params


def reference_forward_f32(x, params):
    """Pure-f32 reference (PyTorch semantics)."""
    h = jnp.maximum(x @ params["w1"] + params["b1"], 0.0)
    h = jnp.maximum(h @ params["w2"] + params["b2"], 0.0)
    return h @ params["w3"] + params["b3"]


def reference_forward_bf16(x, params):
    """Reference mirroring the kernel's numerics (bf16 matmul inputs, f32 acc,
    feature-major)."""
    kp = prepare_params(params)
    B = x.shape[0]
    xT = jnp.zeros((D_IN_PAD, B), jnp.bfloat16).at[:D_IN, :].set(
        x.astype(jnp.bfloat16).T)
    h = jnp.dot(kp["w1t"], xT, preferred_element_type=jnp.float32)
    h = jnp.maximum(h + kp["b1"], 0.0)
    h = jnp.dot(kp["w2t"], h.astype(jnp.bfloat16),
                preferred_element_type=jnp.float32)
    h = jnp.maximum(h + kp["b2"], 0.0)
    out = jnp.dot(kp["w3t"], h.astype(jnp.bfloat16),
                  preferred_element_type=jnp.float32) + kp["b3"]
    return out.T


if __name__ == "__main__":
    key = jax.random.PRNGKey(0)
    k_params, k_x = jax.random.split(key)
    params = init_params(k_params)

    B = 8  # small demo batch; kernel is tuned for B >> 8192
    x = jax.random.normal(k_x, (B, D_IN), dtype=jnp.float32)

    out = genocidax_net(x, params)
    out = jax.block_until_ready(out)
    assert out.shape == (B, D_OUT)

    ref_bf16 = reference_forward_bf16(x, params)
    ref_f32 = reference_forward_f32(x, params)
    assert jnp.allclose(out, ref_bf16, atol=2e-3, rtol=2e-3), \
        "mismatch vs bf16-mirrored reference"
    assert jnp.allclose(out, ref_f32, atol=5e-2, rtol=5e-2), \
        "mismatch vs f32 reference"

    print("KERNEL_OK")
</pallas_src>

<mosaic_0001>
module attributes {stable_mosaic.version = 11 : i64} {
  func.func @mlp_kernel(%arg0: i32, %arg1: memref<32x256xbf16, #tpu.memory_space<vmem>>, %arg2: memref<64x32xbf16, #tpu.memory_space<vmem>>, %arg3: memref<64x1xf32, #tpu.memory_space<vmem>>, %arg4: memref<64x64xbf16, #tpu.memory_space<vmem>>, %arg5: memref<64x1xf32, #tpu.memory_space<vmem>>, %arg6: memref<5x64xbf16, #tpu.memory_space<vmem>>, %arg7: memref<5x1xf32, #tpu.memory_space<vmem>>, %arg8: memref<5x256xf32, #tpu.memory_space<vmem>>) attributes {dimension_semantics = [#tpu.dimension_semantics<parallel>], iteration_bounds = array<i64: 1>, scalar_prefetch = 0 : i64, scratch_operands = 0 : i64, tpu.core_type = #tpu.core_type<tc>, window_params = [{transform_indices = @transform_0, window_bounds = array<i64: 32, 256>}, {pipeline_mode = #tpu.pipeline_mode<synchronous>, transform_indices = @transform_1, window_bounds = array<i64: 64, 32>}, {pipeline_mode = #tpu.pipeline_mode<synchronous>, transform_indices = @transform_2, window_bounds = array<i64: 64, 1>}, {pipeline_mode = #tpu.pipeline_mode<synchronous>, transform_indices = @transform_3, window_bounds = array<i64: 64, 64>}, {pipeline_mode = #tpu.pipeline_mode<synchronous>, transform_indices = @transform_4, window_bounds = array<i64: 64, 1>}, {pipeline_mode = #tpu.pipeline_mode<synchronous>, transform_indices = @transform_5, window_bounds = array<i64: 5, 64>}, {pipeline_mode = #tpu.pipeline_mode<synchronous>, transform_indices = @transform_6, window_bounds = array<i64: 5, 1>}, {transform_indices = @transform_7, window_bounds = array<i64: 5, 256>}]} {
    %c0 = arith.constant 0 : index
    %c0_0 = arith.constant 0 : index
    %0 = vector.load %arg2[%c0, %c0_0] : memref<64x32xbf16, #tpu.memory_space<vmem>>, vector<64x32xbf16>
    %c0_1 = arith.constant 0 : index
    %c0_2 = arith.constant 0 : index
    %1 = vector.load %arg1[%c0_1, %c0_2] : memref<32x256xbf16, #tpu.memory_space<vmem>>, vector<32x256xbf16>
    %cst = arith.constant dense<0.000000e+00> : vector<64x256xf32>
    %2 = tpu.matmul %0, %1, %cst {dimension_numbers = #tpu.dot_dimension_numbers<[1], [0], [0], [1], [0, 0, 1, 1], [], []>} : vector<64x32xbf16>, vector<32x256xbf16>, vector<64x256xf32> -> vector<64x256xf32>
    %c0_3 = arith.constant 0 : index
    %c0_4 = arith.constant 0 : index
    %3 = vector.load %arg3[%c0_3, %c0_4] : memref<64x1xf32, #tpu.memory_space<vmem>>, vector<64x1xf32>
    %4 = vector.broadcast %3 : vector<64x1xf32> to vector<64x256xf32>
    %5 = arith.addf %2, %4 : vector<64x256xf32>
    %cst_5 = arith.constant 0.000000e+00 : f32
    %6 = vector.broadcast %cst_5 : f32 to vector<64x256xf32>
    %7 = arith.maximumf %5, %6 : vector<64x256xf32>
    %c0_6 = arith.constant 0 : index
    %c0_7 = arith.constant 0 : index
    %8 = vector.load %arg4[%c0_6, %c0_7] : memref<64x64xbf16, #tpu.memory_space<vmem>>, vector<64x64xbf16>
    %9 = arith.truncf %7 : vector<64x256xf32> to vector<64x256xbf16>
    %cst_8 = arith.constant dense<0.000000e+00> : vector<64x256xf32>
    %10 = tpu.matmul %8, %9, %cst_8 {dimension_numbers = #tpu.dot_dimension_numbers<[1], [0], [0], [1], [0, 0, 1, 1], [], []>} : vector<64x64xbf16>, vector<64x256xbf16>, vector<64x256xf32> -> vector<64x256xf32>
    %c0_9 = arith.constant 0 : index
    %c0_10 = arith.constant 0 : index
    %11 = vector.load %arg5[%c0_9, %c0_10] : memref<64x1xf32, #tpu.memory_space<vmem>>, vector<64x1xf32>
    %12 = vector.broadcast %11 : vector<64x1xf32> to vector<64x256xf32>
    %13 = arith.addf %10, %12 : vector<64x256xf32>
    %cst_11 = arith.constant 0.000000e+00 : f32
    %14 = vector.broadcast %cst_11 : f32 to vector<64x256xf32>
    %15 = arith.maximumf %13, %14 : vector<64x256xf32>
    %c0_12 = arith.constant 0 : index
    %c0_13 = arith.constant 0 : index
    %16 = vector.load %arg6[%c0_12, %c0_13] : memref<5x64xbf16, #tpu.memory_space<vmem>>, vector<5x64xbf16>
    %17 = arith.truncf %15 : vector<64x256xf32> to vector<64x256xbf16>
    %cst_14 = arith.constant dense<0.000000e+00> : vector<5x256xf32>
    %18 = tpu.matmul %16, %17, %cst_14 {dimension_numbers = #tpu.dot_dimension_numbers<[1], [0], [0], [1], [0, 0, 1, 1], [], []>} : vector<5x64xbf16>, vector<64x256xbf16>, vector<5x256xf32> -> vector<5x256xf32>
    %c0_15 = arith.constant 0 : index
    %c0_16 = arith.constant 0 : index
    %19 = vector.load %arg7[%c0_15, %c0_16] : memref<5x1xf32, #tpu.memory_space<vmem>>, vector<5x1xf32>
    %20 = vector.broadcast %19 : vector<5x1xf32> to vector<5x256xf32>
    %21 = arith.addf %18, %20 : vector<5x256xf32>
    %c0_17 = arith.constant 0 : index
    %c0_18 = arith.constant 0 : index
    %22 = vector.load %arg8[%c0_17, %c0_18] : memref<5x256xf32, #tpu.memory_space<vmem>>, vector<5x256xf32>
    tpu.vector_store %arg8[%c0_17, %c0_18], %21 {strides = array<i32>} : memref<5x256xf32, #tpu.memory_space<vmem>>, vector<5x256xf32>,
    return
  }
  func.func @transform_0(%arg0: i32) -> (i32, i32) {
    %c0_i32 = arith.constant 0 : i32
    %c0_i32_0 = arith.constant 0 : i32
    return %c0_i32, %arg0 : i32, i32
  }
  func.func @transform_1(%arg0: i32) -> (i32, i32) {
    %c0_i32 = arith.constant 0 : i32
    %c0_i32_0 = arith.constant 0 : i32
    %c0_i32_1 = arith.constant 0 : i32
    return %c0_i32, %c0_i32_0 : i32, i32
  }
  func.func @transform_2(%arg0: i32) -> (i32, i32) {
    %c0_i32 = arith.constant 0 : i32
    %c0_i32_0 = arith.constant 0 : i32
    %c0_i32_1 = arith.constant 0 : i32
    return %c0_i32, %c0_i32_0 : i32, i32
  }
  func.func @transform_3(%arg0: i32) -> (i32, i32) {
    %c0_i32 = arith.constant 0 : i32
    %c0_i32_0 = arith.constant 0 : i32
    %c0_i32_1 = arith.constant 0 : i32
    return %c0_i32, %c0_i32_0 : i32, i32
  }
  func.func @transform_4(%arg0: i32) -> (i32, i32) {
    %c0_i32 = arith.constant 0 : i32
    %c0_i32_0 = arith.constant 0 : i32
    %c0_i32_1 = arith.constant 0 : i32
    return %c0_i32, %c0_i32_0 : i32, i32
  }
  func.func @transform_5(%arg0: i32) -> (i32, i32) {
    %c0_i32 = arith.constant 0 : i32
    %c0_i32_0 = arith.constant 0 : i32
    %c0_i32_1 = arith.constant 0 : i32
    return %c0_i32, %c0_i32_0 : i32, i32
  }
  func.func @transform_6(%arg0: i32) -> (i32, i32) {
    %c0_i32 = arith.constant 0 : i32
    %c0_i32_0 = arith.constant 0 : i32
    %c0_i32_1 = arith.constant 0 : i32
    return %c0_i32, %c0_i32_0 : i32, i32
  }
  func.func @transform_7(%arg0: i32) -> (i32, i32) {
    %c0_i32 = arith.constant 0 : i32
    %c0_i32_0 = arith.constant 0 : i32
    return %c0_i32, %arg0 : i32, i32
  }
}

</mosaic_0001>

<bundles_post_ra>
// kernel: tpu_custom_call.1
= control target key start
LH: loop header
LB: loop body
LE: loop exit
PB: predicated region body
PF: predicated region fallthrough
CT: control target
= control target key end

     0   :  { %v554_v2 = vmov 0   ;;  %vm128_vm0 = vcmask 261120   ;;  %s718_s0 = inlined_call_operand.vmem [shape: bf16[32,256], index: 0, kind: input, shape index: {}]   ;;  %s719_s1 = inlined_call_operand.vmem [shape: bf16[64,32], index: 1, kind: input, shape index: {}]   ;;  %s720_s2 = inlined_call_operand.vmem [shape: f32[64,1], index: 2, kind: input, shape index: {}]   ;;  %s721_s3 = inlined_call_operand.vmem [shape: bf16[64,64], index: 3, kind: input, shape index: {}]   ;;  %s722_s4 = inlined_call_operand.vmem [shape: f32[64,1], index: 4, kind: input, shape index: {}]   ;;  %s723_s5 = inlined_call_operand.vmem [shape: bf16[5,64], index: 5, kind: input, shape index: {}]   ;;  %s724_s6 = inlined_call_operand.vmem [shape: f32[5,1], index: 6, kind: input, shape index: {}]   ;;  %s725_s7 = inlined_call_operand.hbm [shape: f32[5,256], index: 7, kind: output, shape index: {}]  }
   0x1   :  { %v516_v0 = vld [vmem:[%s718_s0 + $0x4] ss:$8 sps:$4 sm:$0xff]   ;;  %v518_v1 = vld [vmem:[%s718_s0] ss:$8 sps:$4 sm:$0xff]   ;;  %173 = vmatprep.mubr.bf16.mxu0 %v554_v2  ;;  %514 = vset.pattern.permute.xlu0 %v554_v2  ;;  %v519_v3 = vld [vmem:[%s718_s0 + $0x14] ss:$8 sps:$4 sm:$0xff]  }
   0x2   :  { %141 = vmatprep.subr.bf16.mxu0 %v516_v0  ;;  %515 = vset.pattern.permute.xlu1 %v554_v2  ;;  %v521_v4 = vld [vmem:[%s718_s0 + $0x10] ss:$8 sps:$4 sm:$0xff]   ;;  %v522_v5 = vld [vmem:[%s719_s1] sm:$0xff]   ;;  %v41_v8 = vld [vmem:[%s720_s2 + $0x8] sm:$0xff] }
   0x3   :  { %142 = vmatpush1.bf16.msra.mxu0 %v518_v1  ;;  %359 = vmatprep.mubr.bf16.mxu1 %v554_v2  ;;  %v40_v6 = vld [vmem:[%s720_s2] sm:$0xff]  ;;  %v42_v7 = vld [vmem:[%s720_s2 + $0x10] sm:$0xff]  ;;  %v43_v9 = vld [vmem:[%s720_s2 + $0x18] sm:$0xff] }
   0x4   :  { %143 = vmatprep.subr.bf16.mxu0 %v519_v3  ;;  %50 = vperm.xlu0 %514, %v40_v6   ;;  %v44_v10 = vld [vmem:[%s720_s2 + $0x20] sm:$0xff]  ;;  %v523_v11 = vld [vmem:[%s719_s1 + $0x8] sm:$0xff]  }
   0x5   :  { %60 = vperm.xlu1 %515, %v42_v7   ;;  %v45_v12 = vld [vmem:[%s720_s2 + $0x28] sm:$0xff] }
   0x7   :  { %144 = vmatpush1.bf16.msra.mxu0 %v521_v4 }
   0x8   :  { %55 = vperm.xlu0 %514, %v41_v8  }
   0x9   :  { %65 = vperm.xlu1 %515, %v43_v9  }
   0xa   :  { %499 = vmatmul.mubr.msk.bf16.vlgmr.msra.gmra.mrb[0].mxu0 %vm128_vm0, %v522_v5 }
   0xb   :  { %183 = vmatprep.mubr.bf16.mxu0 %v554_v2 }
   0xc   :  { %70 = vperm.xlu0 %514, %v44_v10  }
   0xd   :  { %12 = vsyncpa [#allocation3], 0  ;;  %v46_v13 = vld [vmem:[%s720_s2 + $0x30] sm:$0xff]  ;;  %75 = vperm.xlu1 %515, %v45_v12   ;;  %v47_v14 = vld [vmem:[%s720_s2 + $0x38] sm:$0xff]  ;;  %vm314_vm1 = vcmask 523264   ;;  %s555_s8 = smov [#allocation2]  }
   0xe   :  { %v246_v15 = vld [vmem:[%s722_s4] sm:$0xff]  ;;  %v247_v16 = vld [vmem:[%s722_s4 + $0x8] sm:$0xff]  ;;  %v524_v17 = vld [vmem:[%s719_s1 + $0x10] sm:$0xff]   ;;  %s483_s9 = sshll.u32 %s555_s8, 4  ;;  %s484_s9 = int_to_ptr.vmem [resolvable:$true] %s483_s9 }
   0xf   :  { %v248_v18 = vld [vmem:[%s722_s4 + $0x10] sm:$0xff]  ;;  %v249_v19 = vld [vmem:[%s722_s4 + $0x18] sm:$0xff]  ;;  %v250_v20 = vld [vmem:[%s722_s4 + $0x20] sm:$0xff]  ;;  %s530_s10 = scalar_lea.vmem %s484_s9, 256  ;;  %p535_p1 = scmp.lt.s32.totalorder %s484_s9, %s484_s9 }
  0x10   :  { %80 = vperm.xlu0 %514, %v46_v13   ;;  %v251_v21 = vld [vmem:[%s722_s4 + $0x28] sm:$0xff]  ;;  %v525_v22 = vld [vmem:[%s719_s1 + $0x18] sm:$0xff]   ;;  %v252_v23 = vld [vmem:[%s722_s4 + $0x30] sm:$0xff]  ;;  %p531_p0 = scmp.ne.s32.totalorder %s484_s9, %s530_s10  ;;  %p536_p2 = scmp.lt.s32.totalorder %s530_s10, %s530_s10 }
  0x11   :  { %85 = vperm.xlu1 %515, %v47_v14   ;;  %v253_v24 = vld [vmem:[%s722_s4 + $0x38] sm:$0xff]  ;;  %v425_v25 = vld [vmem:[%s724_s6] sm:$0x1f] }
  0x12   :  { %500 = vmatmul.mubr.msk.bf16.gmra.mrb[4].mxu0 %vm128_vm0, %v523_v11  ;;  %p537_p3 = por %p536_p2, %p535_p1 }
  0x13   :  { %193 = vmatprep.mubr.bf16.mxu0 %v554_v2 }
  0x14   :  { %256 = vperm.xlu0 %514, %v246_v15   ;;  %p538_p4 = pnand %p537_p3, %p531_p0 }
  0x15   :  { %261 = vperm.xlu1 %515, %v247_v16  }
  0x18   :  { %266 = vperm.xlu0 %514, %v248_v18  }
  0x19   :  { %271 = vperm.xlu1 %515, %v249_v19  }
  0x1a   :  { %501 = vmatmul.mubr.msk.bf16.gmra.mrb[8].mxu0 %vm128_vm0, %v524_v17 }
  0x1b   :  { %203 = vmatprep.mubr.bf16.mxu0 %v554_v2 }
  0x1c   :  { %276 = vperm.xlu0 %514, %v250_v20  }
  0x1d   :  { %281 = vperm.xlu1 %515, %v251_v21  }
  0x20   :  { %286 = vperm.xlu0 %514, %v252_v23  }
  0x21   :  { %291 = vperm.xlu1 %515, %v253_v24  }
  0x22   :  { %502 = vmatmul.mubr.msk.bf16.gmra.mrb[12].mxu0 %vm128_vm0, %v525_v22 }
  0x23   :  { %466 = vmatprep.mubr.bf16.mxu0 %v554_v2 }
  0x24   :  { %428 = vperm.xlu0 %514, %v425_v25  }
  0x83   :  { %v51_v26 = vpop.permute.xlu0 %50 }
  0x84   :  { %v61_v35 = vpop.permute.xlu1 %60 }
  0x87   :  { %v56_v30 = vpop.permute.xlu0 %55 }
  0x88   :  { %v66_v46 = vpop.permute.xlu1 %65 }
  0x8b   :  { %v71_v57 = vpop.permute.xlu0 %70 }
  0x8c   :  { %v76_v62 = vpop.permute.xlu1 %75 }
  0x8f   :  { %v81_v10 = vpop.permute.xlu0 %80 }
  0x90   :  { %v86_v15 = vpop.permute.xlu1 %85 }
  0xdd   :  { %v175_v27 = vpop.f32.mrb[0].mxu0 }
  0xde   :  { %v176_v28 = vadd.f32 %v175_v27, %v51_v26  ;;  %v177_v29 = vpop.f32.mrb[1].mxu0  ;;  %v526_v27 = vld [vmem:[%s721_s3] sm:$0xff]  }
  0xdf   :  { %v178_v31 = vadd.f32 %v177_v29, %v51_v26  ;;  %v179_v32 = vpop.f32.mrb[2].mxu0  ;;  %v528_v29 = vld [vmem:[%s721_s3 + $0x10] sm:$0xff]  }
  0xe0   :  { %v180_v33 = vadd.f32 %v179_v32, %v56_v30  ;;  %v181_v34 = vpop.f32.mrb[3].mxu0  ;;  %v214_v37 = vmax.f32 %v176_v28, 0.0  ;;  %v527_v28 = vld [vmem:[%s721_s3 + $0x8] sm:$0xff]  }
  0xe1   :  { %v182_v36 = vadd.f32 %v181_v34, %v56_v30  ;;  %v215_v39 = vmax.f32 %v178_v31, 0.0  ;;  %v529_v30 = vld [vmem:[%s721_s3 + $0x18] sm:$0xff]   ;;  %v257_v31 = vpop.permute.xlu0 %256 }
  0xe2   :  { %v216_v38 = vmax.f32 %v180_v33, 0.0 }
  0xe3   :  { %v217_v40 = vmax.f32 %v182_v36, 0.0 }
  0xe4   :  { %v238_v41 = vpack.c.bf16 %v216_v38, %v214_v37 }
  0xe5   :  { %v185_v42 = vpop.f32.mrb[4].mxu0  ;;  %v239_v43 = vpack.c.bf16 %v217_v40, %v215_v39 }
  0xe6   :  { %v186_v44 = vadd.f32 %v185_v42, %v61_v35  ;;  %v187_v45 = vpop.f32.mrb[5].mxu0 }
  0xe7   :  { %v188_v47 = vadd.f32 %v187_v45, %v61_v35  ;;  %v189_v48 = vpop.f32.mrb[6].mxu0  ;;  %327 = vmatprep.subr.bf16.mxu1 %v239_v43  ;;  %v262_v35 = vpop.permute.xlu1 %261 }
  0xe8   :  { %v190_v49 = vadd.f32 %v189_v48, %v66_v46  ;;  %v191_v50 = vpop.f32.mrb[7].mxu0  ;;  %328 = vmatpush1.bf16.msra.mxu1 %v238_v41  ;;  %v218_v52 = vmax.f32 %v186_v44, 0.0  ;;  %v267_v45 = vpop.permute.xlu0 %266 }
  0xe9   :  { %v192_v51 = vadd.f32 %v191_v50, %v66_v46  ;;  %v219_v54 = vmax.f32 %v188_v47, 0.0 }
  0xea   :  { %v220_v53 = vmax.f32 %v190_v49, 0.0 }
  0xeb   :  { %v221_v55 = vmax.f32 %v192_v51, 0.0  ;;  %v272_v50 = vpop.permute.xlu1 %271 }
  0xec   :  { %v240_v56 = vpack.c.bf16 %v220_v53, %v218_v52 }
  0xed   :  { %v241_v58 = vpack.c.bf16 %v221_v55, %v219_v54  ;;  %v195_v59 = vpop.f32.mrb[8].mxu0 }
  0xee   :  { %v196_v60 = vadd.f32 %v195_v59, %v71_v57  ;;  %v197_v61 = vpop.f32.mrb[9].mxu0 }
  0xef   :  { %v198_v63 = vadd.f32 %v197_v61, %v71_v57  ;;  %v199_v0 = vpop.f32.mrb[10].mxu0  ;;  %329 = vmatprep.subr.bf16.mxu1 %v241_v58  ;;  %v277_v61 = vpop.permute.xlu0 %276 }
  0xf0   :  { %v200_v1 = vadd.f32 %v199_v0, %v76_v62  ;;  %v201_v3 = vpop.f32.mrb[11].mxu0  ;;  %330 = vmatpush1.bf16.msra.mxu1 %v240_v56  ;;  %v222_v5 = vmax.f32 %v196_v60, 0.0 }
  0xf1   :  { %v202_v4 = vadd.f32 %v201_v3, %v76_v62  ;;  %v223_v7 = vmax.f32 %v198_v63, 0.0  ;;  %v282_v3 = vpop.permute.xlu1 %281 }
  0xf2   :  { %v224_v6 = vmax.f32 %v200_v1, 0.0 }
  0xf3   :  { %v225_v8 = vmax.f32 %v202_v4, 0.0 }
  0xf4   :  { %v242_v9 = vpack.c.bf16 %v224_v6, %v222_v5 }
  0xf5   :  { %v243_v11 = vpack.c.bf16 %v225_v8, %v223_v7  ;;  %v205_v12 = vpop.f32.mrb[12].mxu0 }
  0xf6   :  { %v206_v13 = vadd.f32 %v205_v12, %v81_v10  ;;  %v207_v14 = vpop.f32.mrb[13].mxu0 }
  0xf7   :  { %v208_v16 = vadd.f32 %v207_v14, %v81_v10  ;;  %v209_v17 = vpop.f32.mrb[14].mxu0  ;;  %331 = vmatprep.subr.bf16.mxu1 %v243_v11  ;;  %v287_v14 = vpop.permute.xlu0 %286 }
  0xf8   :  { %v210_v18 = vadd.f32 %v209_v17, %v86_v15  ;;  %v211_v19 = vpop.f32.mrb[15].mxu0  ;;  %332 = vmatpush1.bf16.msra.mxu1 %v242_v9  ;;  %v226_v21 = vmax.f32 %v206_v13, 0.0 }
  0xf9   :  { %v212_v20 = vadd.f32 %v211_v19, %v86_v15  ;;  %v227_v23 = vmax.f32 %v208_v16, 0.0  ;;  %v292_v19 = vpop.permute.xlu1 %291 }
  0xfa   :  { %v228_v22 = vmax.f32 %v210_v18, 0.0 }
  0xfb   :  { %v229_v24 = vmax.f32 %v212_v20, 0.0 }
  0xfc   :  { %v244_v25 = vpack.c.bf16 %v228_v22, %v226_v21 }
  0xfd   :  { %v245_v26 = vpack.c.bf16 %v229_v24, %v227_v23 }
  0xff   :  { %333 = vmatprep.subr.bf16.mxu1 %v245_v26 }
 0x100   :  { %334 = vmatpush1.bf16.msra.mxu1 %v244_v25 }
 0x103   :  { %507 = vmatmul.mubr.msk.bf16.vlgmr.msra.gmra.mrb[0].mxu1 %vm314_vm1, %v526_v27 }
 0x104   :  { %369 = vmatprep.mubr.bf16.mxu1 %v554_v2 }
 0x10b   :  { %508 = vmatmul.mubr.msk.bf16.gmra.mrb[4].mxu1 %vm314_vm1, %v527_v28 }
 0x10c   :  { %379 = vmatprep.mubr.bf16.mxu1 %v554_v2 }
 0x113   :  { %509 = vmatmul.mubr.msk.bf16.gmra.mrb[8].mxu1 %vm314_vm1, %v528_v29 }
 0x114   :  { %389 = vmatprep.mubr.bf16.mxu1 %v554_v2 }
 0x11b   :  { %510 = vmatmul.mubr.msk.bf16.gmra.mrb[12].mxu1 %vm314_vm1, %v529_v30 }
 0x1d6   :  { %v361_v32 = vpop.f32.mrb[0].mxu1 }
 0x1d7   :  { %v362_v33 = vadd.f32 %v361_v32, %v257_v31  ;;  %v363_v34 = vpop.f32.mrb[1].mxu1  ;;  %v429_v32 = vpop.permute.xlu0 %428 }
 0x1d8   :  { %v364_v36 = vadd.f32 %v363_v34, %v257_v31  ;;  %v365_v37 = vpop.f32.mrb[2].mxu1  ;;  %v416_v31 = vld [vmem:[%s723_s5] sm:$0x7] }
 0x1d9   :  { %v366_v38 = vadd.f32 %v365_v37, %v262_v35  ;;  %v367_v39 = vpop.f32.mrb[3].mxu1  ;;  %v400_v41 = vmax.f32 %v362_v33, 0.0 }
 0x1da   :  { %v368_v40 = vadd.f32 %v367_v39, %v262_v35  ;;  %v401_v43 = vmax.f32 %v364_v36, 0.0 }
 0x1db   :  { %v402_v42 = vmax.f32 %v366_v38, 0.0 }
 0x1dc   :  { %v403_v2 = vmax.f32 %v368_v40, 0.0 }
 0x1dd   :  { %v417_v44 = vpack.c.bf16 %v402_v42, %v400_v41 }
 0x1de   :  { %v418_v46 = vpack.c.bf16 %v403_v2, %v401_v43  ;;  %v371_v47 = vpop.f32.mrb[4].mxu1 }
 0x1df   :  { %v372_v48 = vadd.f32 %v371_v47, %v267_v45  ;;  %v373_v49 = vpop.f32.mrb[5].mxu1 }
 0x1e0   :  { %v374_v51 = vadd.f32 %v373_v49, %v267_v45  ;;  %v375_v52 = vpop.f32.mrb[6].mxu1  ;;  %434 = vmatprep.subr.bf16.mxu0 %v418_v46 }
 0x1e1   :  { %v376_v53 = vadd.f32 %v375_v52, %v272_v50  ;;  %v377_v54 = vpop.f32.mrb[7].mxu1  ;;  %435 = vmatpush1.bf16.msra.mxu0 %v417_v44  ;;  %v404_v56 = vmax.f32 %v372_v48, 0.0 }
 0x1e2   :  { %v378_v55 = vadd.f32 %v377_v54, %v272_v50  ;;  %v405_v58 = vmax.f32 %v374_v51, 0.0 }
 0x1e3   :  { %v406_v57 = vmax.f32 %v376_v53, 0.0 }
 0x1e4   :  { %v407_v59 = vmax.f32 %v378_v55, 0.0 }
 0x1e5   :  { %v419_v60 = vpack.c.bf16 %v406_v57, %v404_v56 }
 0x1e6   :  { %v420_v62 = vpack.c.bf16 %v407_v59, %v405_v58  ;;  %v381_v63 = vpop.f32.mrb[8].mxu1 }
 0x1e7   :  { %v382_v0 = vadd.f32 %v381_v63, %v277_v61  ;;  %v383_v1 = vpop.f32.mrb[9].mxu1 }
 0x1e8   :  { %v384_v4 = vadd.f32 %v383_v1, %v277_v61  ;;  %v385_v5 = vpop.f32.mrb[10].mxu1  ;;  %436 = vmatprep.subr.bf16.mxu0 %v420_v62 }
 0x1e9   :  { %v386_v6 = vadd.f32 %v385_v5, %v282_v3  ;;  %v387_v7 = vpop.f32.mrb[11].mxu1  ;;  %437 = vmatpush1.bf16.msra.mxu0 %v419_v60  ;;  %v408_v9 = vmax.f32 %v382_v0, 0.0 }
 0x1ea   :  { %v388_v8 = vadd.f32 %v387_v7, %v282_v3  ;;  %v409_v11 = vmax.f32 %v384_v4, 0.0 }
 0x1eb   :  { %v410_v10 = vmax.f32 %v386_v6, 0.0 }
 0x1ec   :  { %v411_v12 = vmax.f32 %v388_v8, 0.0 }
 0x1ed   :  { %v421_v13 = vpack.c.bf16 %v410_v10, %v408_v9 }
 0x1ee   :  { %v422_v15 = vpack.c.bf16 %v411_v12, %v409_v11  ;;  %v391_v16 = vpop.f32.mrb[12].mxu1 }
 0x1ef   :  { %v392_v17 = vadd.f32 %v391_v16, %v287_v14  ;;  %v393_v18 = vpop.f32.mrb[13].mxu1 }
 0x1f0   :  { %v394_v20 = vadd.f32 %v393_v18, %v287_v14  ;;  %v395_v21 = vpop.f32.mrb[14].mxu1  ;;  %438 = vmatprep.subr.bf16.mxu0 %v422_v15 }
 0x1f1   :  { %v396_v22 = vadd.f32 %v395_v21, %v292_v19  ;;  %v397_v23 = vpop.f32.mrb[15].mxu1  ;;  %439 = vmatpush1.bf16.msra.mxu0 %v421_v13  ;;  %v412_v25 = vmax.f32 %v392_v17, 0.0 }
 0x1f2   :  { %v398_v24 = vadd.f32 %v397_v23, %v292_v19  ;;  %v413_v27 = vmax.f32 %v394_v20, 0.0 }
 0x1f3   :  { %v414_v26 = vmax.f32 %v396_v22, 0.0 }
 0x1f4   :  { %v415_v28 = vmax.f32 %v398_v24, 0.0 }
 0x1f5   :  { %v423_v29 = vpack.c.bf16 %v414_v26, %v412_v25 }
 0x1f6   :  { %v424_v30 = vpack.c.bf16 %v415_v28, %v413_v27 }
 0x1f8   :  { %440 = vmatprep.subr.bf16.mxu0 %v424_v30 }
 0x1f9   :  { %441 = vmatpush1.bf16.msra.mxu0 %v423_v29 }
 0x1fc   :  { %511 = vmatmul.mubr.msk.bf16.vlgmr.msra.gmra.mrb[16].mxu0 %vm314_vm1, %v416_v31 }
 0x2cf   :  { %v468_v33 = vpop.f32.mrb[16].mxu0 }
 0x2d0   :  { %v469_v34 = vadd.f32 %v468_v33, %v429_v32  ;;  %v470_v35 = vpop.f32.mrb[17].mxu0 }
 0x2d1   :  { %v471_v36 = vadd.f32 %v470_v35, %v429_v32  ;;  %v472_v37 = vpop.f32.mrb[18].mxu0 }
 0x2d2   :  { %475 = vst [vmem:[#allocation2] sm:$0x1f] %v469_v34  ;;  %v473_v38 = vpop.f32.mrb[19].mxu0 }
 0x2d3   :  { %476 = vst [vmem:[#allocation2 + $0x8] sm:$0x1f] %v471_v36 }
 0x2d4   :  { %541 = shalt.err (!%p538_p4)
}
 0x2d5   :  { %s542_s11 = scalar_lea.hbm %s725_s7, 256 }
 0x2d6   :  { %p543_p5 = scmp.ne.s32.totalorder %s725_s7, %s542_s11  ;;  %p546_p6 = scmp.lt.u32.totalorder %s542_s11, %s725_s7 }
 0x2d8   :  { %p548_p7 = pnand %p546_p6, %p543_p5 }
 0x2da   :  { %551 = shalt.err (!%p548_p7)
}
 0x2db   :  { %486 = dma.vmem_to_hbm [thread:$0]  %s484_s9, 256, %s725_s7, [#allocation3]  }
 0x2dc   :  { %552 = dma.done.wait [#allocation3], 256  }
 0x2dd   :  { %553 = vsyncadd [#allocation3], 4294967040 }
 0x2de   :  { %490 = vsyncpa [#allocation3], 1 }

</bundles_post_ra>
